<compile_context>
chip_gen: v6e
topology: v6e:2x2x1
jax: 0.10.0
libtpu: 0.0.40
codegen_flags: <defaults>
</compile_context>

<pallas_src>
import jax
import jax.numpy as jnp
from jax.experimental import pallas as pl
from jax.experimental.pallas import tpu as pltpu


def _qnet_kernel(x_ref, w1_ref, b1_ref, w2_ref, b2_ref, w3_ref, b3_ref, o_ref):
    # fc1: single K=(S+A) bf16 matmul on the MXU, f32 accumulation.
    h1 = jnp.dot(x_ref[...], w1_ref[...], preferred_element_type=jnp.float32)
    h1 = jnp.maximum(h1 + b1_ref[...], 0.0)                     # (TILE_B, H) f32

    # fc2: dominant (H x H) matmul on the MXU in bf16, f32 accumulation.
    h2 = jnp.dot(h1.astype(jnp.bfloat16), w2_ref[...],
                 preferred_element_type=jnp.float32)
    h2 = jnp.maximum(h2 + b2_ref[...], 0.0)                     # (TILE_B, H) f32

    # fc3 (out_features == 1): VPU multiply + lane reduce instead of an N=1
    # MXU matmul; result written lane-dense along the last output dim.
    q = jnp.sum(h2 * w3_ref[...], axis=-1)                      # (TILE_B,) f32
    o_ref[...] = (q + b3_ref[...]).reshape(o_ref.shape)         # (1, 1, TILE_B)


def _round_up(x, m):
    return ((x + m - 1) // m) * m


def _choose_tile_b(batch, max_tile=2048):
    """Pick the batch tile: minimize padding, amortize grid-step overhead, and
    keep >= 2 (even) grid steps for larger batches so v7x's two TensorCores
    both get work on the "parallel" batch axis."""
    if batch <= 64:
        # Single small tile; bf16 sublane packing wants multiples of 16.
        return _round_up(max(batch, 8), 16)
    num_tiles = max(2, pl.cdiv(batch, max_tile))
    if num_tiles % 2:
        num_tiles += 1
    tile = pl.cdiv(batch, num_tiles)
    tile16 = _round_up(tile, 16)
    tile128 = _round_up(tile, 128)
    # Prefer 128-row alignment (fully unmasked lane-dense output stores, whole
    # MXU passes) unless it would add noticeably more padded-row MXU work.
    return tile128 if (tile128 - tile16) <= max(16, tile16 // 16) else tile16


def prepare_qnetwork_params(params):
    """One-time layout/cast of QNetwork params, hoisted out of the forward.

    params = (w1, b1, w2, b2, w3, b3) with w1: (S+A, H), w2: (H, H), w3: (H, 1).
    """
    w1, b1, w2, b2, w3, b3 = params
    H = w1.shape[-1]
    return {
        "w1": jnp.asarray(w1).astype(jnp.bfloat16),              # (S+A, H)
        "b1": jnp.asarray(b1, jnp.float32).reshape(1, H),
        "w2": jnp.asarray(w2).astype(jnp.bfloat16),              # (H, H)
        "b2": jnp.asarray(b2, jnp.float32).reshape(1, H),
        "w3": jnp.asarray(w3, jnp.float32).reshape(1, H),        # fc3 as a row
        "b3": jnp.asarray(b3, jnp.float32).reshape(1, 1),
    }


def qnetwork_forward(state, action, params, tile_b=None):
    """state: (B, S) f32, action: (B, A) f32 -> (B, 1) f32.

    `params` may be the raw (w1, b1, w2, b2, w3, b3) tuple or the dict returned
    by prepare_qnetwork_params (preferred: the casts/reshapes are then done
    once instead of every call).
    """
    p = params if isinstance(params, dict) else prepare_qnetwork_params(params)
    w1, b1, w2, b2, w3, b3 = p["w1"], p["b1"], p["w2"], p["b2"], p["w3"], p["b3"]

    B, S = state.shape
    A = action.shape[-1]
    K = S + A
    H = w1.shape[-1]
    assert w1.shape[0] == K, "w1 must have shape (state_dim + action_dim, H)"

    if tile_b is None:
        tile_b = _choose_tile_b(B)
    num_tiles = pl.cdiv(B, tile_b)
    b_pad = num_tiles * tile_b

    # torch.cat((state, action), dim=-1): one (B, S+A) bf16 slab (cheap, and it
    # lets fc1 be a single K=(S+A) matmul instead of two split-K dots).
    x = jnp.concatenate([state, action], axis=-1).astype(jnp.bfloat16)
    if b_pad != B:                                   # pad batch to a tile multiple
        x = jnp.pad(x, ((0, b_pad - B), (0, 0)))

    resident = lambda i: (0, 0)                      # weights stay in VMEM

    flops = 2 * b_pad * (K * H + H * H + H)
    bytes_accessed = (x.size * 2
                      + (w1.size + w2.size) * 2
                      + (b1.size + b2.size + w3.size + b3.size) * 4
                      + b_pad * 4)

    out = pl.pallas_call(
        _qnet_kernel,
        out_shape=jax.ShapeDtypeStruct((num_tiles, 1, tile_b), jnp.float32),
        grid=(num_tiles,),
        in_specs=[
            pl.BlockSpec((tile_b, K), lambda i: (i, 0)),
            pl.BlockSpec((K, H), resident),
            pl.BlockSpec((1, H), resident),
            pl.BlockSpec((H, H), resident),
            pl.BlockSpec((1, H), resident),
            pl.BlockSpec((1, H), resident),
            pl.BlockSpec((1, 1), resident),
        ],
        out_specs=pl.BlockSpec((1, 1, tile_b), lambda i: (i, 0, 0)),
        compiler_params=pltpu.CompilerParams(
            dimension_semantics=("parallel",)),
        cost_estimate=pl.CostEstimate(
            flops=flops, transcendentals=0, bytes_accessed=bytes_accessed),
    )(x, w1, b1, w2, b2, w3, b3)

    return out.reshape(b_pad, 1)[:B]


def init_params(key, state_dim, action_dim, hidden_dim=256):
    in_dim = state_dim + action_dim
    ks = jax.random.split(key, 6)

    def linear(kw, kb, fan_in, fan_out):
        # PyTorch-style uniform init with bound 1/sqrt(fan_in).
        bound = 1.0 / jnp.sqrt(fan_in)
        w = jax.random.uniform(kw, (fan_in, fan_out), jnp.float32, -bound, bound)
        b = jax.random.uniform(kb, (1, fan_out), jnp.float32, -bound, bound)
        return w, b

    w1, b1 = linear(ks[0], ks[1], in_dim, hidden_dim)
    w2, b2 = linear(ks[2], ks[3], hidden_dim, hidden_dim)
    w3, b3 = linear(ks[4], ks[5], hidden_dim, 1)
    return (w1, b1, w2, b2, w3, b3)


def _reference(state, action, params):
    w1, b1, w2, b2, w3, b3 = params
    x = jnp.concatenate([state, action], axis=-1)
    h = jnp.maximum(x @ w1 + b1, 0.0)
    h = jnp.maximum(h @ w2 + b2, 0.0)
    return h @ w3 + b3


if __name__ == "__main__":
    key = jax.random.PRNGKey(0)
    k_state, k_action, k_params, k_state2, k_action2 = jax.random.split(key, 5)

    STATE_DIM, ACTION_DIM, HIDDEN = 12, 4, 256
    params = init_params(k_params, STATE_DIM, ACTION_DIM, HIDDEN)
    prepared = prepare_qnetwork_params(params)          # hoisted weight prep

    fwd = jax.jit(qnetwork_forward)

    # Case 1: small batch, single-tile path.
    B1 = 64
    state1 = jax.random.normal(k_state, (B1, STATE_DIM), jnp.float32)
    action1 = jax.random.normal(k_action, (B1, ACTION_DIM), jnp.float32)
    out1 = fwd(state1, action1, prepared)
    jax.block_until_ready(out1)

    # Case 2: batch not a tile multiple -> multi-tile grid + padded tail.
    B2 = 200
    state2 = jax.random.normal(k_state2, (B2, STATE_DIM), jnp.float32)
    action2 = jax.random.normal(k_action2, (B2, ACTION_DIM), jnp.float32)
    out2 = fwd(state2, action2, prepared)
    jax.block_until_ready(out2)

    # Pure-f32 JAX reference; kernel runs bf16 matmuls with f32 accumulation,
    # so the tolerance is loosened accordingly.
    ref1 = _reference(state1, action1, params)
    ref2 = _reference(state2, action2, params)

    assert out1.shape == (B1, 1) and out2.shape == (B2, 1)
    err1 = float(jnp.max(jnp.abs(out1 - ref1)))
    err2 = float(jnp.max(jnp.abs(out2 - ref2)))
    assert jnp.allclose(out1, ref1, atol=1e-1, rtol=1e-1), err1
    assert jnp.allclose(out2, ref2, atol=1e-1, rtol=1e-1), err2

    print("KERNEL_OK")
</pallas_src>

<mosaic_0001>
module attributes {stable_mosaic.version = 11 : i64} {
  func.func @_qnet_kernel(%arg0: i32, %arg1: memref<64x16xbf16, #tpu.memory_space<vmem>>, %arg2: memref<16x256xbf16, #tpu.memory_space<vmem>>, %arg3: memref<1x256xf32, #tpu.memory_space<vmem>>, %arg4: memref<256x256xbf16, #tpu.memory_space<vmem>>, %arg5: memref<1x256xf32, #tpu.memory_space<vmem>>, %arg6: memref<1x256xf32, #tpu.memory_space<vmem>>, %arg7: memref<1x1xf32, #tpu.memory_space<vmem>>, %arg8: memref<1x1x64xf32, #tpu.memory_space<vmem>>) attributes {dimension_semantics = [#tpu.dimension_semantics<parallel>], iteration_bounds = array<i64: 1>, scalar_prefetch = 0 : i64, scratch_operands = 0 : i64, tpu.core_type = #tpu.core_type<tc>, window_params = [{transform_indices = @transform_0, window_bounds = array<i64: 64, 16>}, {pipeline_mode = #tpu.pipeline_mode<synchronous>, transform_indices = @transform_1, window_bounds = array<i64: 16, 256>}, {pipeline_mode = #tpu.pipeline_mode<synchronous>, transform_indices = @transform_2, window_bounds = array<i64: 1, 256>}, {pipeline_mode = #tpu.pipeline_mode<synchronous>, transform_indices = @transform_3, window_bounds = array<i64: 256, 256>}, {pipeline_mode = #tpu.pipeline_mode<synchronous>, transform_indices = @transform_4, window_bounds = array<i64: 1, 256>}, {pipeline_mode = #tpu.pipeline_mode<synchronous>, transform_indices = @transform_5, window_bounds = array<i64: 1, 256>}, {pipeline_mode = #tpu.pipeline_mode<synchronous>, transform_indices = @transform_6, window_bounds = array<i64: 1, 1>}, {transform_indices = @transform_7, window_bounds = array<i64: 1, 1, 64>}]} {
    %c0 = arith.constant 0 : index
    %c0_0 = arith.constant 0 : index
    %0 = vector.load %arg1[%c0, %c0_0] : memref<64x16xbf16, #tpu.memory_space<vmem>>, vector<64x16xbf16>
    %c0_1 = arith.constant 0 : index
    %c0_2 = arith.constant 0 : index
    %1 = vector.load %arg2[%c0_1, %c0_2] : memref<16x256xbf16, #tpu.memory_space<vmem>>, vector<16x256xbf16>
    %cst = arith.constant dense<0.000000e+00> : vector<64x256xf32>
    %2 = tpu.matmul %0, %1, %cst {dimension_numbers = #tpu.dot_dimension_numbers<[1], [0], [0], [1], [0, 0, 1, 1], [], []>} : vector<64x16xbf16>, vector<16x256xbf16>, vector<64x256xf32> -> vector<64x256xf32>
    %c0_3 = arith.constant 0 : index
    %c0_4 = arith.constant 0 : index
    %3 = vector.load %arg3[%c0_3, %c0_4] : memref<1x256xf32, #tpu.memory_space<vmem>>, vector<1x256xf32>
    %4 = vector.broadcast %3 : vector<1x256xf32> to vector<64x256xf32>
    %5 = arith.addf %2, %4 : vector<64x256xf32>
    %cst_5 = arith.constant 0.000000e+00 : f32
    %6 = vector.broadcast %cst_5 : f32 to vector<64x256xf32>
    %7 = arith.maximumf %5, %6 : vector<64x256xf32>
    %8 = arith.truncf %7 : vector<64x256xf32> to vector<64x256xbf16>
    %c0_6 = arith.constant 0 : index
    %c0_7 = arith.constant 0 : index
    %9 = vector.load %arg4[%c0_6, %c0_7] : memref<256x256xbf16, #tpu.memory_space<vmem>>, vector<256x256xbf16>
    %cst_8 = arith.constant dense<0.000000e+00> : vector<64x256xf32>
    %10 = tpu.matmul %8, %9, %cst_8 {dimension_numbers = #tpu.dot_dimension_numbers<[1], [0], [0], [1], [0, 0, 1, 1], [], []>} : vector<64x256xbf16>, vector<256x256xbf16>, vector<64x256xf32> -> vector<64x256xf32>
    %c0_9 = arith.constant 0 : index
    %c0_10 = arith.constant 0 : index
    %11 = vector.load %arg5[%c0_9, %c0_10] : memref<1x256xf32, #tpu.memory_space<vmem>>, vector<1x256xf32>
    %12 = vector.broadcast %11 : vector<1x256xf32> to vector<64x256xf32>
    %13 = arith.addf %10, %12 : vector<64x256xf32>
    %cst_11 = arith.constant 0.000000e+00 : f32
    %14 = vector.broadcast %cst_11 : f32 to vector<64x256xf32>
    %15 = arith.maximumf %13, %14 : vector<64x256xf32>
    %c0_12 = arith.constant 0 : index
    %c0_13 = arith.constant 0 : index
    %16 = vector.load %arg6[%c0_12, %c0_13] : memref<1x256xf32, #tpu.memory_space<vmem>>, vector<1x256xf32>
    %17 = vector.broadcast %16 : vector<1x256xf32> to vector<64x256xf32>
    %18 = arith.mulf %15, %17 : vector<64x256xf32>
    %cst_14 = arith.constant dense<0.000000e+00> : vector<64xf32>
    %19 = vector.multi_reduction <add>, %18, %cst_14 [1] : vector<64x256xf32> to vector<64xf32>
    %c0_15 = arith.constant 0 : index
    %c0_16 = arith.constant 0 : index
    %20 = vector.load %arg7[%c0_15, %c0_16] : memref<1x1xf32, #tpu.memory_space<vmem>>, vector<1x1xf32>
    %21 = vector.shape_cast %19 : vector<64xf32> to vector<1x64xf32>
    %22 = vector.broadcast %20 : vector<1x1xf32> to vector<1x64xf32>
    %23 = arith.addf %21, %22 : vector<1x64xf32>
    %24 = vector.shape_cast %23 : vector<1x64xf32> to vector<1x1x64xf32>
    %c0_17 = arith.constant 0 : index
    %c0_18 = arith.constant 0 : index
    %c0_19 = arith.constant 0 : index
    %25 = vector.load %arg8[%c0_17, %c0_18, %c0_19] : memref<1x1x64xf32, #tpu.memory_space<vmem>>, vector<1x1x64xf32>
    tpu.vector_store %arg8[%c0_17, %c0_18, %c0_19], %24 {strides = array<i32>} : memref<1x1x64xf32, #tpu.memory_space<vmem>>, vector<1x1x64xf32>,
    return
  }
  func.func @transform_0(%arg0: i32) -> (i32, i32) {
    %c0_i32 = arith.constant 0 : i32
    %c0_i32_0 = arith.constant 0 : i32
    return %arg0, %c0_i32 : i32, i32
  }
  func.func @transform_1(%arg0: i32) -> (i32, i32) {
    %c0_i32 = arith.constant 0 : i32
    %c0_i32_0 = arith.constant 0 : i32
    %c0_i32_1 = arith.constant 0 : i32
    return %c0_i32, %c0_i32_0 : i32, i32
  }
  func.func @transform_2(%arg0: i32) -> (i32, i32) {
    %c0_i32 = arith.constant 0 : i32
    %c0_i32_0 = arith.constant 0 : i32
    %c0_i32_1 = arith.constant 0 : i32
    return %c0_i32, %c0_i32_0 : i32, i32
  }
  func.func @transform_3(%arg0: i32) -> (i32, i32) {
    %c0_i32 = arith.constant 0 : i32
    %c0_i32_0 = arith.constant 0 : i32
    %c0_i32_1 = arith.constant 0 : i32
    return %c0_i32, %c0_i32_0 : i32, i32
  }
  func.func @transform_4(%arg0: i32) -> (i32, i32) {
    %c0_i32 = arith.constant 0 : i32
    %c0_i32_0 = arith.constant 0 : i32
    %c0_i32_1 = arith.constant 0 : i32
    return %c0_i32, %c0_i32_0 : i32, i32
  }
  func.func @transform_5(%arg0: i32) -> (i32, i32) {
    %c0_i32 = arith.constant 0 : i32
    %c0_i32_0 = arith.constant 0 : i32
    %c0_i32_1 = arith.constant 0 : i32
    return %c0_i32, %c0_i32_0 : i32, i32
  }
  func.func @transform_6(%arg0: i32) -> (i32, i32) {
    %c0_i32 = arith.constant 0 : i32
    %c0_i32_0 = arith.constant 0 : i32
    %c0_i32_1 = arith.constant 0 : i32
    return %c0_i32, %c0_i32_0 : i32, i32
  }
  func.func @transform_7(%arg0: i32) -> (i32, i32, i32) {
    %c0_i32 = arith.constant 0 : i32
    %c0_i32_0 = arith.constant 0 : i32
    %c0_i32_1 = arith.constant 0 : i32
    return %arg0, %c0_i32, %c0_i32_0 : i32, i32, i32
  }
}

</mosaic_0001>

<bundles_post_ra>
// kernel: qnetwork_forward.1
= control target key start
LH: loop header
LB: loop body
LE: loop exit
PB: predicated region body
PF: predicated region fallthrough
CT: control target
= control target key end

     0   :  { %s980_s0 = inlined_call_operand.vmem [shape: bf16[64,16], index: 0, kind: input, shape index: {}]   ;;  %s981_s1 = inlined_call_operand.vmem [shape: bf16[16,256], index: 1, kind: input, shape index: {}]   ;;  %s982_s2 = inlined_call_operand.vmem [shape: f32[1,256], index: 2, kind: input, shape index: {}]   ;;  %s983_s3 = inlined_call_operand.hbm [shape: bf16[256,256], index: 3, kind: input, shape index: {}]   ;;  %s984_s4 = inlined_call_operand.vmem [shape: f32[1,256], index: 4, kind: input, shape index: {}]   ;;  %s985_s5 = inlined_call_operand.vmem [shape: f32[1,256], index: 5, kind: input, shape index: {}]   ;;  %s986_s6 = inlined_call_operand.<no memory space> [shape: f32[1,1], index: 6, kind: input, shape index: {}]   ;;  %s987_s7 = inlined_call_operand.hbm [shape: f32[1,1,64], index: 7, kind: output, shape index: {}]  }
   0x1   :  { %v12_v0 = vstv %s986_s6 }
   0x2   :  { %13 = vst [vmem:[#allocation2] sm:$0x1] %v12_v0 }
   0x3   :  { %14 = vsyncpa [#allocation4], 0 }
   0x4   :  { %15 = vsyncpa [#allocation5], 0  ;;  %s830_s26 = smov [#allocation3]  }
   0x5   :  { %s27_s27 = sshll.u32 %s830_s26, 4  ;;  %s28_s27 = int_to_ptr.vmem [resolvable:$true] %s27_s27 }
   0x6   :  { %s794_s28 = scalar_lea.vmem %s28_s27, 4096  ;;  %p799_p1 = scmp.lt.s32.totalorder %s28_s27, %s28_s27 }
   0x7   :  { %p795_p0 = scmp.ne.s32.totalorder %s28_s27, %s794_s28  ;;  %p800_p2 = scmp.lt.s32.totalorder %s794_s28, %s794_s28 }
   0x9   :  { %p801_p3 = por %p800_p2, %p799_p1 }
   0xb   :  { %p802_p4 = pnand %p801_p3, %p795_p0 }
   0xd   :  { %805 = shalt.err (!%p802_p4)
}
   0xe   :  { %s831_s29 = smov 128   ;;  %s832_s30 = smov 8  }
   0xf   :  { %33 = dma.hbm_to_vmem [thread:$0]  %s983_s3, 4096, %s28_s27, [#allocation4], %s831_s29, %s831_s29, %s832_s30  }
  0x10   :  { %826 = dma.done.wait [#allocation4], 4096  }
  0x11   :  { %827 = vsyncadd [#allocation4], 4294963200  ;;  %v833_v1 = vmov 0   ;;  %v731_v2 = vld [vmem:[%s981_s1 + $0x4] ss:$8 sps:$4 sm:$0xff]   ;;  %vm96_vm0 = vcmask 130048   ;;  %v56_v40 = vlaneseq }
  0x12   :  { %141 = vmatprep.mubr.bf16.mxu0 %v833_v1  ;;  %729 = vset.pattern.permute.xlu1 %v833_v1  ;;  %v733_v3 = vld [vmem:[%s981_s1] ss:$8 sps:$4 sm:$0xff]   ;;  %v738_v5 = vld [vmem:[#allocation3 + $0x70] ss:$8 sps:$4 sm:$0xff]   ;;  %vm588_vm1 = vcmask 130112   ;;  %vm595_vm2 = vcmask 195712  }
  0x13   :  { %730 = vset.pattern.permute.xlu0 %v833_v1  ;;  %123 = vmatprep.subr.bf16.mxu0 %v731_v2  ;;  %v734_v4 = vld [vmem:[%s980_s0] sm:$0xff]   ;;  %v735_v9 = vld [vmem:[%s980_s0 + $0x8] sm:$0xff]   ;;  %v744_v11 = vld [vmem:[#allocation3 + $0x50] ss:$8 sps:$4 sm:$0xff]   ;;  %v904_v41 = vshrl.u32 %v56_v40, 7  ;;  %vm602_vm3 = vcmask 261312  }
  0x14   :  { %124 = vmatpush1.bf16.msra.mxu0 %v733_v3  ;;  %v740_v6 = vld [vmem:[#allocation3 + $0x74] ss:$8 sps:$4 sm:$0xff]   ;;  %v743_v7 = vld [vmem:[#allocation3 + $0x64] ss:$8 sps:$4 sm:$0xff]   ;;  %v741_v8 = vld [vmem:[#allocation3 + $0x60] ss:$8 sps:$4 sm:$0xff]  }
  0x15   :  { %410 = vmatprep.subr.bf16.mxu0 %v740_v6  ;;  %692 = vmatprep.subr.bf16.mxu1 %v740_v6  ;;  %v746_v10 = vld [vmem:[#allocation3 + $0x54] ss:$8 sps:$4 sm:$0xff]   ;;  %v749_v12 = vld [vmem:[#allocation3 + $0x44] ss:$8 sps:$4 sm:$0xff]   ;;  %v747_v13 = vld [vmem:[#allocation3 + $0x40] ss:$8 sps:$4 sm:$0xff]  }
  0x16   :  { %708 = vmatpush1.bf16.msra.mxu1 %v738_v5  ;;  %v736_v14 = vld [vmem:[%s980_s0 + $0x10] sm:$0xff]   ;;  %v753_v18 = vld [vmem:[#allocation3 + $0x20] ss:$8 sps:$4 sm:$0xff]   ;;  %v737_v19 = vld [vmem:[%s980_s0 + $0x18] sm:$0xff]   ;;  %v907_v42 = vsub.s32 1, %v904_v41  ;;  %v910_v43 = vsub.s32 0, %v904_v41 }
  0x17   :  { %656 = vmatmul.mubr.msk.bf16.vlgmr.msra.gmra.mxu0 %vm96_vm0, %v734_v4  ;;  %693 = vmatprep.subr.bf16.mxu1 %v743_v7  ;;  %v752_v15 = vld [vmem:[#allocation3 + $0x34] ss:$8 sps:$4 sm:$0xff]   ;;  %v750_v16 = vld [vmem:[#allocation3 + $0x30] ss:$8 sps:$4 sm:$0xff]   ;;  %v755_v17 = vld [vmem:[#allocation3 + $0x24] ss:$8 sps:$4 sm:$0xff]  }
  0x18   :  { %151 = vmatprep.mubr.bf16.mxu0 %v833_v1  ;;  %411 = vmatpush1.bf16.msra.mxu0 %v738_v5  ;;  %v758_v20 = vld [vmem:[#allocation3 + $0x14] ss:$8 sps:$4 sm:$0xff]   ;;  %v756_v21 = vld [vmem:[#allocation3 + $0x10] ss:$8 sps:$4 sm:$0xff]   ;;  %v761_v22 = vld [vmem:[#allocation3 + $0x4] ss:$8 sps:$4 sm:$0xff]  }
  0x19   :  { %412 = vmatprep.subr.bf16.mxu0 %v743_v7  ;;  %v759_v23 = vld [vmem:[#allocation3] ss:$8 sps:$4 sm:$0xff]   ;;  %v764_v24 = vld [vmem:[#allocation3 + $0xf4] ss:$8 sps:$4 sm:$0xff]   ;;  %v762_v25 = vld [vmem:[#allocation3 + $0xf0] ss:$8 sps:$4 sm:$0xff]  }
  0x1a   :  { %709 = vmatpush1.bf16.msra.mxu1 %v741_v8  ;;  %v767_v26 = vld [vmem:[#allocation3 + $0xe4] ss:$8 sps:$4 sm:$0xff]   ;;  %v765_v27 = vld [vmem:[#allocation3 + $0xe0] ss:$8 sps:$4 sm:$0xff]   ;;  %v770_v28 = vld [vmem:[#allocation3 + $0xd4] ss:$8 sps:$4 sm:$0xff]  }
  0x1b   :  { %694 = vmatprep.subr.bf16.mxu1 %v746_v10  ;;  %v768_v29 = vld [vmem:[#allocation3 + $0xd0] ss:$8 sps:$4 sm:$0xff]   ;;  %v773_v30 = vld [vmem:[#allocation3 + $0xc4] ss:$8 sps:$4 sm:$0xff]   ;;  %v771_v31 = vld [vmem:[#allocation3 + $0xc0] ss:$8 sps:$4 sm:$0xff]  }
  0x1c   :  { %413 = vmatpush1.bf16.msra.mxu0 %v741_v8  ;;  %v776_v32 = vld [vmem:[#allocation3 + $0xb4] ss:$8 sps:$4 sm:$0xff]   ;;  %v774_v33 = vld [vmem:[#allocation3 + $0xb0] ss:$8 sps:$4 sm:$0xff]   ;;  %v779_v34 = vld [vmem:[#allocation3 + $0xa4] ss:$8 sps:$4 sm:$0xff]  }
  0x1d   :  { %414 = vmatprep.subr.bf16.mxu0 %v746_v10  ;;  %v777_v35 = vld [vmem:[#allocation3 + $0xa0] ss:$8 sps:$4 sm:$0xff]   ;;  %v782_v36 = vld [vmem:[#allocation3 + $0x94] ss:$8 sps:$4 sm:$0xff]   ;;  %v780_v37 = vld [vmem:[#allocation3 + $0x90] ss:$8 sps:$4 sm:$0xff]  }
  0x1e   :  { %710 = vmatpush1.bf16.msra.mxu1 %v744_v11  ;;  %v785_v38 = vld [vmem:[#allocation3 + $0x84] ss:$8 sps:$4 sm:$0xff]   ;;  %v783_v39 = vld [vmem:[#allocation3 + $0x80] ss:$8 sps:$4 sm:$0xff]   ;;  %vm609_vm4 = vcmask 326912   ;;  %vm616_vm5 = vcmask 392512  }
  0x1f   :  { %657 = vmatmul.mubr.msk.bf16.gmra.mxu0 %vm96_vm0, %v735_v9  ;;  %695 = vmatprep.subr.bf16.mxu1 %v749_v12  ;;  %v54_v44 = vld [vmem:[%s982_s2] sm:$0x3]  ;;  %vm623_vm6 = vcmask 458112   ;;  %vm630_vm7 = vcmask 523712   ;;  %vm633_vm8 = vcmask 516096  }
  0x20   :  { %161 = vmatprep.mubr.bf16.mxu0 %v833_v1  ;;  %415 = vmatpush1.bf16.msra.mxu0 %v744_v11  ;;  %v63_v46 = vrot.slane %v54_v44, %v907_v42  ;;  %v59_v47 = vrot.slane %v54_v44, %v910_v43 }
  0x21   :  { %416 = vmatprep.subr.bf16.mxu0 %v749_v12 }
  0x22   :  { %711 = vmatpush1.bf16.msra.mxu1 %v747_v13 }
  0x23   :  { %696 = vmatprep.subr.bf16.mxu1 %v752_v15 }
  0x24   :  { %417 = vmatpush1.bf16.msra.mxu0 %v747_v13 }
  0x25   :  { %418 = vmatprep.subr.bf16.mxu0 %v752_v15 }
  0x26   :  { %712 = vmatpush1.bf16.msra.mxu1 %v750_v16 }
  0x27   :  { %658 = vmatmul.mubr.msk.bf16.gmra.mxu0 %vm96_vm0, %v736_v14  ;;  %697 = vmatprep.subr.bf16.mxu1 %v755_v17 }
  0x28   :  { %171 = vmatprep.mubr.bf16.mxu0 %v833_v1  ;;  %419 = vmatpush1.bf16.msra.mxu0 %v750_v16 }
  0x29   :  { %420 = vmatprep.subr.bf16.mxu0 %v755_v17 }
  0x2a   :  { %713 = vmatpush1.bf16.msra.mxu1 %v753_v18 }
  0x2b   :  { %698 = vmatprep.subr.bf16.mxu1 %v758_v20 }
  0x2c   :  { %421 = vmatpush1.bf16.msra.mxu0 %v753_v18 }
  0x2d   :  { %422 = vmatprep.subr.bf16.mxu0 %v758_v20 }
  0x2e   :  { %714 = vmatpush1.bf16.msra.mxu1 %v756_v21 }
  0x2f   :  { %659 = vmatmul.mubr.msk.bf16.gmra.mxu0 %vm96_vm0, %v737_v19  ;;  %699 = vmatprep.subr.bf16.mxu1 %v761_v22 }
  0x30   :  { %423 = vmatpush1.bf16.msra.mxu0 %v756_v21 }
  0x31   :  { %424 = vmatprep.subr.bf16.mxu0 %v761_v22 }
  0x32   :  { %715 = vmatpush1.bf16.msra.mxu1 %v759_v23 }
  0x33   :  { %700 = vmatprep.subr.bf16.mxu1 %v764_v24 }
  0x34   :  { %425 = vmatpush1.bf16.msra.mxu0 %v759_v23 }
  0x35   :  { %426 = vmatprep.subr.bf16.mxu0 %v764_v24 }
  0x36   :  { %716 = vmatpush2.bf16.msra.mxu1 %v762_v25 }
  0x37   :  { %701 = vmatprep.subr.bf16.mxu1 %v767_v26 }
  0x38   :  { %427 = vmatpush2.bf16.msra.mxu0 %v762_v25 }
  0x39   :  { %428 = vmatprep.subr.bf16.mxu0 %v767_v26 }
  0x3a   :  { %717 = vmatpush2.bf16.msra.mxu1 %v765_v27 }
  0x3b   :  { %702 = vmatprep.subr.bf16.mxu1 %v770_v28 }
  0x3c   :  { %429 = vmatpush2.bf16.msra.mxu0 %v765_v27 }
  0x3d   :  { %430 = vmatprep.subr.bf16.mxu0 %v770_v28 }
  0x3e   :  { %718 = vmatpush2.bf16.msra.mxu1 %v768_v29 }
  0x3f   :  { %703 = vmatprep.subr.bf16.mxu1 %v773_v30 }
  0x40   :  { %431 = vmatpush2.bf16.msra.mxu0 %v768_v29 }
  0x41   :  { %432 = vmatprep.subr.bf16.mxu0 %v773_v30 }
  0x42   :  { %719 = vmatpush2.bf16.msra.mxu1 %v771_v31 }
  0x43   :  { %704 = vmatprep.subr.bf16.mxu1 %v776_v32 }
  0x44   :  { %433 = vmatpush2.bf16.msra.mxu0 %v771_v31 }
  0x45   :  { %434 = vmatprep.subr.bf16.mxu0 %v776_v32 }
  0x46   :  { %720 = vmatpush2.bf16.msra.mxu1 %v774_v33 }
  0x47   :  { %705 = vmatprep.subr.bf16.mxu1 %v779_v34 }
  0x48   :  { %435 = vmatpush2.bf16.msra.mxu0 %v774_v33 }
  0x49   :  { %436 = vmatprep.subr.bf16.mxu0 %v779_v34 }
  0x4a   :  { %721 = vmatpush2.bf16.msra.mxu1 %v777_v35 }
  0x4b   :  { %706 = vmatprep.subr.bf16.mxu1 %v782_v36 }
  0x4c   :  { %437 = vmatpush2.bf16.msra.mxu0 %v777_v35 }
  0x4d   :  { %438 = vmatprep.subr.bf16.mxu0 %v782_v36 }
  0x4e   :  { %722 = vmatpush2.bf16.msra.mxu1 %v780_v37 }
  0x4f   :  { %707 = vmatprep.subr.bf16.mxu1 %v785_v38 }
  0x50   :  { %439 = vmatpush2.bf16.msra.mxu0 %v780_v37 }
  0x51   :  { %440 = vmatprep.subr.bf16.mxu0 %v785_v38 }
  0x52   :  { %723 = vmatpush2.bf16.msra.mxu1 %v783_v39 }
  0x54   :  { %441 = vmatpush2.bf16.msra.mxu0 %v783_v39  ;;  %v238_v39 = vld [vmem:[%s984_s4] sm:$0x3]  ;;  %s834_s4 = smov [#allocation6]  }
  0x55   :  { %v921_v44 = vrot.slane %v238_v39, %v910_v43 }
  0xd7   :  { %v143_v45 = vpop.f32.mrf.mxu0 }
  0xd8   :  { %v144_v52 = vadd.f32 %v143_v45, %v59_v47  ;;  %v924_v45 = vrot.slane %v238_v39, %v907_v42 }
  0xd9   :  { %v145_v48 = vpop.f32.mrf.mxu0 }
  0xda   :  { %v146_v50 = vadd.f32 %v145_v48, %v63_v46  ;;  %v182_v59 = vmax.f32 %v144_v52, 0.0 }
  0xdb   :  { %v147_v49 = vpop.f32.mrf.mxu0 }
  0xdc   :  { %v148_v51 = vadd.f32 %v147_v49, %v59_v47  ;;  %v183_v57 = vmax.f32 %v146_v50, 0.0 }
  0xdd   :  { %v149_v53 = vpop.f32.mrf.mxu0 }
  0xde   :  { %v150_v54 = vadd.f32 %v149_v53, %v63_v46  ;;  %v184_v55 = vmax.f32 %v148_v51, 0.0 }
  0xdf   :  { %v153_v56 = vpop.f32.mrf.mxu0 }
  0xe0   :  { %v185_v58 = vmax.f32 %v150_v54, 0.0  ;;  %v198_v62 = vpack.c.bf16 %v184_v55, %v182_v59  ;;  %v154_v2 = vadd.f32 %v153_v56, %v59_v47 }
  0xe1   :  { %v155_v60 = vpop.f32.mrf.mxu0 }
  0xe2   :  { %v199_v61 = vpack.c.bf16 %v185_v58, %v183_v57  ;;  %v156_v0 = vadd.f32 %v155_v60, %v63_v46  ;;  %v186_v9 = vmax.f32 %v154_v2, 0.0 }
  0xe3   :  { %v157_v63 = vpop.f32.mrf.mxu0 }
  0xe4   :  { %v158_v1 = vadd.f32 %v157_v63, %v59_v47  ;;  %442 = vmatprep.mubr.bf16.mxu0 %v199_v61  ;;  %v187_v7 = vmax.f32 %v156_v0, 0.0 }
  0xe5   :  { %v159_v3 = vpop.f32.mrf.mxu0  ;;  %443 = vmatmul.mubr.bf16.vlgmr.msra.gmra.mxu0 %v198_v62 }
  0xe6   :  { %v160_v4 = vadd.f32 %v159_v3, %v63_v46  ;;  %v188_v5 = vmax.f32 %v158_v1, 0.0 }
  0xe7   :  { %v163_v6 = vpop.f32.mrf.mxu0 }
  0xe8   :  { %v189_v8 = vmax.f32 %v160_v4, 0.0  ;;  %v200_v12 = vpack.c.bf16 %v188_v5, %v186_v9  ;;  %v164_v16 = vadd.f32 %v163_v6, %v59_v47 }
  0xe9   :  { %v165_v10 = vpop.f32.mrf.mxu0 }
  0xea   :  { %v201_v11 = vpack.c.bf16 %v189_v8, %v187_v7  ;;  %v166_v14 = vadd.f32 %v165_v10, %v63_v46  ;;  %v190_v23 = vmax.f32 %v164_v16, 0.0 }
  0xeb   :  { %v167_v13 = vpop.f32.mrf.mxu0 }
  0xec   :  { %v168_v15 = vadd.f32 %v167_v13, %v59_v47  ;;  %452 = vmatprep.mubr.bf16.mxu1 %v201_v11  ;;  %v191_v21 = vmax.f32 %v166_v14, 0.0 }
  0xed   :  { %v169_v17 = vpop.f32.mrf.mxu0  ;;  %453 = vmatmul.mubr.bf16.vlgmr.msra.gmra.mxu1 %v200_v12 }
  0xee   :  { %v170_v18 = vadd.f32 %v169_v17, %v63_v46  ;;  %v192_v19 = vmax.f32 %v168_v15, 0.0 }
  0xef   :  { %v173_v20 = vpop.f32.mrf.mxu0 }
  0xf0   :  { %v193_v22 = vmax.f32 %v170_v18, 0.0  ;;  %v202_v26 = vpack.c.bf16 %v192_v19, %v190_v23  ;;  %v174_v27 = vadd.f32 %v173_v20, %v59_v47 }
  0xf1   :  { %v175_v24 = vpop.f32.mrf.mxu0 }
  0xf2   :  { %v203_v25 = vpack.c.bf16 %v193_v22, %v191_v21  ;;  %v176_v29 = vadd.f32 %v175_v24, %v63_v46  ;;  %v194_v33 = vmax.f32 %v174_v27, 0.0 }
  0xf3   :  { %v177_v28 = vpop.f32.mrf.mxu0 }
  0xf4   :  { %v178_v30 = vadd.f32 %v177_v28, %v59_v47  ;;  %462 = vmatprep.mubr.bf16.mxu1 %v203_v25  ;;  %v195_v35 = vmax.f32 %v176_v29, 0.0 }
  0xf5   :  { %v179_v31 = vpop.f32.mrf.mxu0  ;;  %463 = vmatmul.mubr.bf16.gmra.mxu1 %v202_v26 }
  0xf6   :  { %v180_v32 = vadd.f32 %v179_v31, %v63_v46  ;;  %v196_v34 = vmax.f32 %v178_v30, 0.0  ;;  %v499_v46 = vld [vmem:[%s985_s5] sm:$0x3]  ;;  %s641_s5 = sshll.u32 %s834_s4, 4  ;;  %s642_s5 = int_to_ptr.vmem [resolvable:$true] %s641_s5 }
  0xf7   :  { %v932_v52 = vrot.slane %v499_v46, %v910_v43  ;;  %v935_v53 = vrot.slane %v499_v46, %v907_v42  ;;  %s806_s23 = scalar_lea.vmem %s642_s5, 16  ;;  %s810_s24 = scalar_lea.vmem %s642_s5, 32 }
  0xf8   :  { %v197_v36 = vmax.f32 %v180_v32, 0.0  ;;  %v204_v38 = vpack.c.bf16 %v196_v34, %v194_v33  ;;  %p807_p5 = scmp.ne.s32.totalorder %s642_s5, %s806_s23  ;;  %p811_p6 = scmp.lt.s32.totalorder %s642_s5, %s642_s5 }
  0xf9   :  { %p812_p7 = scmp.lt.s32.totalorder %s810_s24, %s806_s23 }
  0xfa   :  { %v205_v37 = vpack.c.bf16 %v197_v36, %v195_v35 }
  0xfb   :  { %p813_p8 = por %p812_p7, %p811_p6 }
  0xfc   :  { %472 = vmatprep.mubr.bf16.mxu1 %v205_v37 }
  0xfd   :  { %473 = vmatmul.mubr.bf16.gmra.mxu1 %v204_v38  ;;  %p814_p9 = pnand %p813_p8, %p807_p5 }
 0x1a5   :  { %v444_v47 = vpop.f32.mrf.mxu0 }
 0x1a6   :  { %v445_v48 = vadd.f32 %v444_v47, %v921_v44 }
 0x1a7   :  { %v446_v49 = vpop.f32.mrf.mxu0 }
 0x1a8   :  { %v483_v50 = vmax.f32 %v445_v48, 0.0  ;;  %v447_v51 = vadd.f32 %v446_v49, %v924_v45 }
 0x1a9   :  { %v448_v54 = vpop.f32.mrf.mxu0 }
 0x1aa   :  { %v484_v55 = vmax.f32 %v447_v51, 0.0  ;;  %v449_v56 = vadd.f32 %v448_v54, %v921_v44  ;;  %v511_v60 = vmul.f32 %v932_v52, %v483_v50 }
 0x1ab   :  { %v450_v57 = vpop.f32.mrf.mxu0 }
 0x1ac   :  { %v485_v58 = vmax.f32 %v449_v56, 0.0  ;;  %v451_v59 = vadd.f32 %v450_v57, %v924_v45  ;;  %v512_v61 = vmul.f32 %v935_v53, %v484_v55 }
 0x1ad   :  { %v454_v62 = vpop.f32.mrf.mxu1 }
 0x1ae   :  { %v486_v63 = vmax.f32 %v451_v59, 0.0  ;;  %v455_v0 = vadd.f32 %v454_v62, %v921_v44  ;;  %v527_v1 = vadd.f32 %v512_v61, %v511_v60  ;;  %v513_v42 = vmul.f32 %v932_v52, %v485_v58 }
 0x1af   :  { %v456_v2 = vpop.f32.mrf.mxu1 }
 0x1b0   :  { %v514_v3 = vmul.f32 %v935_v53, %v486_v63  ;;  %v487_v4 = vmax.f32 %v455_v0, 0.0  ;;  %v457_v5 = vadd.f32 %v456_v2, %v924_v45  ;;  %528 = vadd.xlane.f32.xlu0 %v527_v1 }
 0x1b1   :  { %v458_v6 = vpop.f32.mrf.mxu1 }
 0x1b2   :  { %v488_v7 = vmax.f32 %v457_v5, 0.0  ;;  %v459_v8 = vadd.f32 %v458_v6, %v921_v44  ;;  %v530_v9 = vadd.f32 %v514_v3, %v513_v42  ;;  %v515_v13 = vmul.f32 %v932_v52, %v487_v4 }
 0x1b3   :  { %v460_v10 = vpop.f32.mrf.mxu1  ;;  %v578_v3 = vand.u32 127, %v56_v40 }
 0x1b4   :  { %v489_v11 = vmax.f32 %v459_v8, 0.0  ;;  %v461_v12 = vadd.f32 %v460_v10, %v924_v45  ;;  %531 = vadd.xlane.f32.xlu0 %v530_v9  ;;  %v516_v14 = vmul.f32 %v935_v53, %v488_v7 }
 0x1b5   :  { %v464_v15 = vpop.f32.mrf.mxu1  ;;  %v583_v5 = vadd.s32 4294967288, %v578_v3  ;;  %v618_v6 = vadd.s32 4294967248, %v578_v3  ;;  %v590_v7 = vadd.s32 4294967280, %v578_v3  ;;  %v597_v8 = vadd.s32 4294967272, %v578_v3 }
 0x1b6   :  { %v490_v16 = vmax.f32 %v461_v12, 0.0  ;;  %v465_v17 = vadd.f32 %v464_v15, %v921_v44  ;;  %v533_v18 = vadd.f32 %v516_v14, %v515_v13  ;;  %v517_v20 = vmul.f32 %v932_v52, %v489_v11 }
 0x1b7   :  { %v466_v19 = vpop.f32.mrf.mxu1  ;;  %v611_v10 = vadd.s32 4294967256, %v578_v3  ;;  %v581_v12 = vsub.s32 %v578_v3, %v904_v41  ;;  %v586_v13 = vsub.s32 %v583_v5, %v904_v41  ;;  %v621_v14 = vsub.s32 %v618_v6, %v904_v41 }
 0x1b8   :  { %v518_v21 = vmul.f32 %v935_v53, %v490_v16  ;;  %v491_v22 = vmax.f32 %v465_v17, 0.0  ;;  %v467_v23 = vadd.f32 %v466_v19, %v924_v45  ;;  %534 = vadd.xlane.f32.xlu1 %v533_v18  ;;  %v625_v15 = vadd.s32 4294967240, %v578_v3 }
 0x1b9   :  { %v468_v24 = vpop.f32.mrf.mxu1  ;;  %v593_v40 = vsub.s32 %v590_v7, %v904_v41  ;;  %v600_v16 = vsub.s32 %v597_v8, %v904_v41 }
 0x1ba   :  { %v492_v25 = vmax.f32 %v467_v23, 0.0  ;;  %v469_v26 = vadd.f32 %v468_v24, %v921_v44  ;;  %v536_v27 = vadd.f32 %v518_v21, %v517_v20  ;;  %v519_v29 = vmul.f32 %v932_v52, %v491_v22 }
 0x1bb   :  { %v470_v28 = vpop.f32.mrf.mxu1 }
 0x1bc   :  { %v520_v30 = vmul.f32 %v935_v53, %v492_v25  ;;  %v493_v31 = vmax.f32 %v469_v26, 0.0  ;;  %v471_v32 = vadd.f32 %v470_v28, %v924_v45  ;;  %537 = vadd.xlane.f32.xlu1 %v536_v27  ;;  %v628_v28 = vsub.s32 %v625_v15, %v904_v41 }
 0x1bd   :  { %v474_v33 = vpop.f32.mrf.mxu1 }
 0x1be   :  { %v494_v34 = vmax.f32 %v471_v32, 0.0  ;;  %v475_v35 = vadd.f32 %v474_v33, %v921_v44  ;;  %v539_v36 = vadd.f32 %v520_v30, %v519_v29  ;;  %v521_v38 = vmul.f32 %v932_v52, %v493_v31 }
 0x1bf   :  { %v476_v37 = vpop.f32.mrf.mxu1 }
 0x1c0   :  { %v522_v39 = vmul.f32 %v935_v53, %v494_v34  ;;  %v495_v47 = vmax.f32 %v475_v35, 0.0  ;;  %v477_v46 = vadd.f32 %v476_v37, %v924_v45  ;;  %540 = vadd.xlane.f32.xlu0 %v539_v36 }
 0x1c1   :  { %v478_v48 = vpop.f32.mrf.mxu1 }
 0x1c2   :  { %v496_v49 = vmax.f32 %v477_v46, 0.0  ;;  %v479_v50 = vadd.f32 %v478_v48, %v921_v44  ;;  %v542_v51 = vadd.f32 %v522_v39, %v521_v38  ;;  %v523_v55 = vmul.f32 %v932_v52, %v495_v47  ;;  %v551_v44 = vld [vmem:[#allocation2] sm:$0x1] }
 0x1c3   :  { %v480_v54 = vpop.f32.mrf.mxu1 }
 0x1c4   :  { %v524_v56 = vmul.f32 %v935_v53, %v496_v49  ;;  %v497_v57 = vmax.f32 %v479_v50, 0.0  ;;  %v481_v58 = vadd.f32 %v480_v54, %v924_v45  ;;  %543 = vadd.xlane.f32.xlu1 %v542_v51 }
 0x1c6   :  { %v498_v59 = vmax.f32 %v481_v58, 0.0  ;;  %v545_v60 = vadd.f32 %v524_v56, %v523_v55  ;;  %v525_v61 = vmul.f32 %v932_v52, %v497_v57  ;;  %v604_v52 = vadd.s32 4294967264, %v578_v3 }
 0x1c8   :  { %v526_v62 = vmul.f32 %v935_v53, %v498_v59  ;;  %546 = vadd.xlane.f32.xlu0 %v545_v60  ;;  %v607_v20 = vsub.s32 %v604_v52, %v904_v41 }
 0x1ca   :  { %v548_v63 = vadd.f32 %v526_v62, %v525_v61 }
 0x1cc   :  { %549 = vadd.xlane.f32.xlu0 %v548_v63 }
 0x1d5   :  { %554 = vperm.xlu1 %729, %v551_v44  }
 0x239   :  { %v529_v0 = vpop.xlane.xlu0 %528 }
 0x23d   :  { %v532_v2 = vpop.xlane.xlu0 %531 }
 0x241   :  { %v535_v1 = vpop.xlane.xlu1 %534 }
 0x245   :  { %v538_v42 = vpop.xlane.xlu1 %537 }
 0x249   :  { %v541_v4 = vpop.xlane.xlu0 %540 }
 0x24d   :  { %v544_v45 = vpop.xlane.xlu1 %543 }
 0x251   :  { %v555_v9 = vpop.permute.xlu1 %554  ;;  %v547_v53 = vpop.xlane.xlu0 %546 }
 0x252   :  { %v560_v11 = vrot.slane %v555_v9, %v910_v43  ;;  %v614_v43 = vsub.s32 %v611_v10, %v904_v41 }
 0x254   :  { %v561_v17 = vadd.f32 %v560_v11, %v529_v0  ;;  %v562_v18 = vadd.f32 %v560_v11, %v532_v2  ;;  %v563_v19 = vadd.f32 %v560_v11, %v535_v1  ;;  %v564_v22 = vadd.f32 %v560_v11, %v538_v42 }
 0x255   :  { %v550_v21 = vpop.xlane.xlu0 %549  ;;  %v565_v23 = vadd.f32 %v560_v11, %v541_v4  ;;  %v566_v24 = vadd.f32 %v560_v11, %v544_v45  ;;  %v567_v27 = vadd.f32 %v560_v11, %v547_v53 }
 0x256   :  { %v582_v25 = vrot.slane %v561_v17, %v581_v12  ;;  %v587_v26 = vrot.slane %v562_v18, %v586_v13  ;;  %v594_v29 = vrot.slane %v563_v19, %v593_v40  ;;  %v568_v30 = vadd.f32 %v560_v11, %v550_v21 }
 0x257   :  { %v601_v32 = vrot.slane %v564_v22, %v600_v16  ;;  %v608_v34 = vrot.slane %v565_v23, %v607_v20  ;;  %v615_v36 = vrot.slane %v566_v24, %v614_v43  ;;  %v622_v37 = vrot.slane %v567_v27, %v621_v14 }
 0x258   :  { %v589_v31 = vsel %vm588_vm1, %v587_v26, %v582_v25  ;;  %v629_v39 = vrot.slane %v568_v30, %v628_v28 }
 0x259   :  { %v596_v33 = vsel %vm595_vm2, %v594_v29, %v589_v31 }
 0x25a   :  { %v603_v35 = vsel %vm602_vm3, %v601_v32, %v596_v33 }
 0x25b   :  { %v610_v38 = vsel %vm609_vm4, %v608_v34, %v603_v35 }
 0x25c   :  { %v617_v47 = vsel %vm616_vm5, %v615_v36, %v610_v38 }
 0x25d   :  { %v624_v41 = vsel %vm623_vm6, %v622_v37, %v617_v47 }
 0x25e   :  { %v631_v46 = vsel %vm630_vm7, %v629_v39, %v624_v41 }
 0x25f   :  { %634 = vst.msk [vmem:[#allocation6] sm:$0x1] %vm633_vm8, %v631_v46 }
 0x260   :  { %817 = shalt.err (!%p814_p9)
}
 0x261   :  { %644 = dma.vmem_to_hbm [thread:$0]  %s642_s5, 16, %s987_s7, [#allocation5]  }
 0x262   :  { %828 = dma.done.wait [#allocation5], 16  }
 0x263   :  { %829 = vsyncadd [#allocation5], 4294967280 }
 0x264   :  { %648 = vsyncpa [#allocation4], 1 }
 0x265   :  { %649 = vsyncpa [#allocation5], 1 }

</bundles_post_ra>
